<compile_context>
chip_gen: v7x
topology: tpu7x:2x2x1
jax: 0.10.0
libtpu: 0.0.40
codegen_flags: <defaults>
</compile_context>

<pallas_src>
import jax
import jax.numpy as jnp
from jax.experimental import pallas as pl
from jax.experimental.pallas import tpu as pltpu

IN_DIM = 1024       # NIST36: 32x32 flattened images -> train_x.shape[1] == 1024
HIDDEN = 64         # hidden_size in the module
OUT_DIM = 36        # NIST36: 36 classes -> train_y.shape[1] == 36

SUBLANE = 8         # f32 vreg sublane count
MAX_ROW_TILE = 1024 # 1024*1024*4 B x-tile, double-buffered ~8 MiB VMEM; safe everywhere


def _round_up(x, m):
    return ((x + m - 1) // m) * m


def _num_tensorcores():
    """Best-effort TensorCores-per-chip: v7x has 2, v5e/v6e have 1."""
    try:
        kind = jax.devices()[0].device_kind.lower()
        if "v7" in kind or "7x" in kind:
            return 2
    except Exception:
        pass
    return 1


def _choose_row_tile(n, num_cores):
    """Single large tile on 1-TC chips (splitting only lowers DMA efficiency);
    on 2-TC chips split so the 'parallel' batch axis yields grid >= 2."""
    n8 = _round_up(max(n, 1), SUBLANE)
    if num_cores > 1 and SUBLANE < n8 <= num_cores * MAX_ROW_TILE:
        return _round_up(-(-n8 // num_cores), SUBLANE)
    return min(n8, MAX_ROW_TILE)


def _mlp_kernel(x_ref, w1_ref, b1_ref, w2_ref, b2_ref, o_ref):
    # layer 1: (tm, D) @ (D, H) on the MXU, f32 accumulation (inputs f32 or bf16)
    z = jnp.dot(x_ref[...], w1_ref[...], preferred_element_type=jnp.float32)
    z = z + b1_ref[...].astype(jnp.float32)
    # sigmoid(z) = 0.5 * (tanh(z/2) + 1): single EUP op, exact in f32
    h = 0.5 * (jnp.tanh(0.5 * z) + 1.0)
    # output layer: (tm, H) @ (H, O) on the MXU
    y = jnp.dot(h.astype(w2_ref.dtype), w2_ref[...],
                preferred_element_type=jnp.float32)
    o_ref[...] = (y + b2_ref[...].astype(jnp.float32)).astype(o_ref.dtype)


def net_forward(x, w1, b1, w2, b2, *, tm=None, out_dtype=None):
    """Forward pass of Net.

    x: (N, D); w1: (D, H); b1: (H,) or (1, H); w2: (H, O); b2: (O,) or (1, O).
    Weights are stored transposed vs PyTorch nn.Linear so the kernel computes
    x @ W + b directly. Returns (N, O) in `out_dtype` (default: x.dtype).
    No padding / slicing is done in the wrapper: the ragged last batch block is
    masked by Pallas, and the 64/36-wide dims use full-array-dim blocks.
    """
    N, D = x.shape
    H = w1.shape[1]
    O = w2.shape[1]
    b1 = b1.reshape(1, H)
    b2 = b2.reshape(1, O)
    out_dtype = x.dtype if out_dtype is None else out_dtype

    if tm is None:
        tm = _choose_row_tile(N, _num_tensorcores())
    tm = max(SUBLANE, _round_up(min(tm, MAX_ROW_TILE), SUBLANE))

    grid = (pl.cdiv(N, tm),)
    return pl.pallas_call(
        _mlp_kernel,
        out_shape=jax.ShapeDtypeStruct((N, O), out_dtype),
        grid_spec=pltpu.PrefetchScalarGridSpec(
            num_scalar_prefetch=0,
            grid=grid,
            in_specs=[
                pl.BlockSpec((tm, D), lambda i: (i, 0)),   # x row tile (ragged edge masked)
                pl.BlockSpec((D, H), lambda i: (0, 0)),    # W1, VMEM-resident (constant idx)
                pl.BlockSpec((1, H), lambda i: (0, 0)),    # b1
                pl.BlockSpec((H, O), lambda i: (0, 0)),    # W2, VMEM-resident
                pl.BlockSpec((1, O), lambda i: (0, 0)),    # b2
            ],
            out_specs=pl.BlockSpec((tm, O), lambda i: (i, 0)),
        ),
        compiler_params=pltpu.CompilerParams(
            # batch axis is fully independent -> shards across v7x's 2 TCs;
            # harmless (near-zero impact) on single-TC v5e/v6e.
            dimension_semantics=("parallel",),
            vmem_limit_bytes=32 * 1024 * 1024,   # ~9 MiB used at tm=1024 f32
        ),
    )(x, w1, b1, w2, b2)


def init_params(key, in_dim, hidden, out_dim, dtype=jnp.float32):
    """Deterministic init mimicking PyTorch nn.Linear default (uniform +-1/sqrt(fan_in))."""
    k1, k2, k3, k4 = jax.random.split(key, 4)
    lim1 = 1.0 / jnp.sqrt(in_dim)
    lim2 = 1.0 / jnp.sqrt(hidden)
    w1 = jax.random.uniform(k1, (in_dim, hidden), dtype, -lim1, lim1)
    b1 = jax.random.uniform(k2, (1, hidden), dtype, -lim1, lim1)
    w2 = jax.random.uniform(k3, (hidden, out_dim), dtype, -lim2, lim2)
    b2 = jax.random.uniform(k4, (1, out_dim), dtype, -lim2, lim2)
    return w1, b1, w2, b2


if __name__ == "__main__":
    key = jax.random.PRNGKey(0)
    kx, kp = jax.random.split(key)

    # --- f32 path, small batch deliberately NOT a multiple of 8 (ragged block) ---
    N = 20
    x = jax.random.normal(kx, (N, IN_DIM), jnp.float32)
    w1, b1, w2, b2 = init_params(kp, IN_DIM, HIDDEN, OUT_DIM)

    out = jax.block_until_ready(net_forward(x, w1, b1, w2, b2))
    ref = jax.nn.sigmoid(x @ w1 + b1) @ w2 + b2
    assert out.shape == (N, OUT_DIM)
    assert jnp.allclose(out, ref, atol=1e-5, rtol=1e-5)

    # --- bf16 path (halves the dominant x/W1 HBM traffic), f32 output ---
    N2 = 300
    x2 = jax.random.normal(kx, (N2, IN_DIM), jnp.float32)
    xb, w1b, b1b, w2b, b2b = (a.astype(jnp.bfloat16) for a in (x2, w1, b1, w2, b2))
    out_bf16 = jax.block_until_ready(
        net_forward(xb, w1b, b1b, w2b, b2b, out_dtype=jnp.float32))
    ref2 = jax.nn.sigmoid(x2 @ w1 + b1) @ w2 + b2
    assert out_bf16.shape == (N2, OUT_DIM)
    assert jnp.allclose(out_bf16, ref2, atol=2e-2, rtol=2e-2)

    print("KERNEL_OK")
</pallas_src>

<mosaic_0001>
module attributes {stable_mosaic.version = 11 : i64} {
  func.func @_mlp_kernel(%arg0: i32, %arg1: memref<24x1024xf32, #tpu.memory_space<vmem>>, %arg2: memref<1024x64xf32, #tpu.memory_space<vmem>>, %arg3: memref<1x64xf32, #tpu.memory_space<vmem>>, %arg4: memref<64x36xf32, #tpu.memory_space<vmem>>, %arg5: memref<1x36xf32, #tpu.memory_space<vmem>>, %arg6: memref<24x36xf32, #tpu.memory_space<vmem>>) attributes {dimension_semantics = [#tpu.dimension_semantics<parallel>], iteration_bounds = array<i64: 1>, scalar_prefetch = 0 : i64, scratch_operands = 0 : i64, tpu.core_type = #tpu.core_type<tc>, window_params = [{transform_indices = @transform_0, window_bounds = array<i64: 24, 1024>}, {pipeline_mode = #tpu.pipeline_mode<synchronous>, transform_indices = @transform_1, window_bounds = array<i64: 1024, 64>}, {pipeline_mode = #tpu.pipeline_mode<synchronous>, transform_indices = @transform_2, window_bounds = array<i64: 1, 64>}, {pipeline_mode = #tpu.pipeline_mode<synchronous>, transform_indices = @transform_3, window_bounds = array<i64: 64, 36>}, {pipeline_mode = #tpu.pipeline_mode<synchronous>, transform_indices = @transform_4, window_bounds = array<i64: 1, 36>}, {transform_indices = @transform_5, window_bounds = array<i64: 24, 36>}]} {
    %c0 = arith.constant 0 : index
    %c0_0 = arith.constant 0 : index
    %0 = vector.load %arg1[%c0, %c0_0] : memref<24x1024xf32, #tpu.memory_space<vmem>>, vector<24x1024xf32>
    %c0_1 = arith.constant 0 : index
    %c0_2 = arith.constant 0 : index
    %1 = vector.load %arg2[%c0_1, %c0_2] : memref<1024x64xf32, #tpu.memory_space<vmem>>, vector<1024x64xf32>
    %cst = arith.constant dense<0.000000e+00> : vector<24x64xf32>
    %2 = tpu.matmul %0, %1, %cst {dimension_numbers = #tpu.dot_dimension_numbers<[1], [0], [0], [1], [0, 0, 1, 1], [], []>} : vector<24x1024xf32>, vector<1024x64xf32>, vector<24x64xf32> -> vector<24x64xf32>
    %c0_3 = arith.constant 0 : index
    %c0_4 = arith.constant 0 : index
    %3 = vector.load %arg3[%c0_3, %c0_4] : memref<1x64xf32, #tpu.memory_space<vmem>>, vector<1x64xf32>
    %4 = vector.broadcast %3 : vector<1x64xf32> to vector<24x64xf32>
    %5 = arith.addf %2, %4 : vector<24x64xf32>
    %cst_5 = arith.constant 5.000000e-01 : f32
    %6 = vector.broadcast %cst_5 : f32 to vector<24x64xf32>
    %7 = arith.mulf %6, %5 : vector<24x64xf32>
    %8 = math.tanh %7 : vector<24x64xf32>
    %cst_6 = arith.constant 1.000000e+00 : f32
    %9 = vector.broadcast %cst_6 : f32 to vector<24x64xf32>
    %10 = arith.addf %8, %9 : vector<24x64xf32>
    %cst_7 = arith.constant 5.000000e-01 : f32
    %11 = vector.broadcast %cst_7 : f32 to vector<24x64xf32>
    %12 = arith.mulf %11, %10 : vector<24x64xf32>
    %c0_8 = arith.constant 0 : index
    %c0_9 = arith.constant 0 : index
    %13 = vector.load %arg4[%c0_8, %c0_9] : memref<64x36xf32, #tpu.memory_space<vmem>>, vector<64x36xf32>
    %cst_10 = arith.constant dense<0.000000e+00> : vector<24x36xf32>
    %14 = tpu.matmul %12, %13, %cst_10 {dimension_numbers = #tpu.dot_dimension_numbers<[1], [0], [0], [1], [0, 0, 1, 1], [], []>} : vector<24x64xf32>, vector<64x36xf32>, vector<24x36xf32> -> vector<24x36xf32>
    %c0_11 = arith.constant 0 : index
    %c0_12 = arith.constant 0 : index
    %15 = vector.load %arg5[%c0_11, %c0_12] : memref<1x36xf32, #tpu.memory_space<vmem>>, vector<1x36xf32>
    %16 = vector.broadcast %15 : vector<1x36xf32> to vector<24x36xf32>
    %17 = arith.addf %14, %16 : vector<24x36xf32>
    %c0_13 = arith.constant 0 : index
    %c0_14 = arith.constant 0 : index
    %18 = vector.load %arg6[%c0_13, %c0_14] : memref<24x36xf32, #tpu.memory_space<vmem>>, vector<24x36xf32>
    tpu.vector_store %arg6[%c0_13, %c0_14], %17 {strides = array<i32>} : memref<24x36xf32, #tpu.memory_space<vmem>>, vector<24x36xf32>,
    return
  }
  func.func @transform_0(%arg0: i32) -> (i32, i32) {
    %c0_i32 = arith.constant 0 : i32
    %c0_i32_0 = arith.constant 0 : i32
    return %arg0, %c0_i32 : i32, i32
  }
  func.func @transform_1(%arg0: i32) -> (i32, i32) {
    %c0_i32 = arith.constant 0 : i32
    %c0_i32_0 = arith.constant 0 : i32
    %c0_i32_1 = arith.constant 0 : i32
    return %c0_i32, %c0_i32_0 : i32, i32
  }
  func.func @transform_2(%arg0: i32) -> (i32, i32) {
    %c0_i32 = arith.constant 0 : i32
    %c0_i32_0 = arith.constant 0 : i32
    %c0_i32_1 = arith.constant 0 : i32
    return %c0_i32, %c0_i32_0 : i32, i32
  }
  func.func @transform_3(%arg0: i32) -> (i32, i32) {
    %c0_i32 = arith.constant 0 : i32
    %c0_i32_0 = arith.constant 0 : i32
    %c0_i32_1 = arith.constant 0 : i32
    return %c0_i32, %c0_i32_0 : i32, i32
  }
  func.func @transform_4(%arg0: i32) -> (i32, i32) {
    %c0_i32 = arith.constant 0 : i32
    %c0_i32_0 = arith.constant 0 : i32
    %c0_i32_1 = arith.constant 0 : i32
    return %c0_i32, %c0_i32_0 : i32, i32
  }
  func.func @transform_5(%arg0: i32) -> (i32, i32) {
    %c0_i32 = arith.constant 0 : i32
    %c0_i32_0 = arith.constant 0 : i32
    return %arg0, %c0_i32 : i32, i32
  }
}

</mosaic_0001>

<bundles_post_ra>
// kernel: tpu_custom_call.1
= control target key start
LH: loop header
LB: loop body
LE: loop exit
PB: predicated region body
PF: predicated region fallthrough
CT: control target
= control target key end

     0   :  { %s1566_s0 = inlined_call_operand.vmem [shape: f32[20,1024], index: 0, kind: input, shape index: {}]   ;;  %s1567_s1 = inlined_call_operand.vmem [shape: f32[1024,64], index: 1, kind: input, shape index: {}]   ;;  %s1568_s2 = inlined_call_operand.vmem [shape: f32[1,64], index: 2, kind: input, shape index: {}]   ;;  %s1569_s3 = inlined_call_operand.vmem [shape: f32[64,36], index: 3, kind: input, shape index: {}]   ;;  %s1570_s4 = inlined_call_operand.vmem [shape: f32[1,36], index: 4, kind: input, shape index: {}]   ;;  %s1571_s5 = inlined_call_operand.hbm [shape: f32[20,36], index: 5, kind: output, shape index: {}]  }
   0x1   :  { %v61_v0 = vld [vmem:[%s1567_s1 + $0x80] sm:$0xff]  ;;  %v62_v1 = vld [vmem:[%s1567_s1 + $0x88] sm:$0xff]  ;;  %v63_v11 = vld [vmem:[%s1567_s1 + $0x90] sm:$0xff] }
   0x2   :  { %v45_v2 = vld [vmem:[%s1567_s1] sm:$0xff]  ;;  %v842_v3 = vpack.c.bf16 %v62_v1, %v61_v0  ;;  %v46_v4 = vld [vmem:[%s1567_s1 + $0x8] sm:$0xff]  ;;  %v64_v13 = vld [vmem:[%s1567_s1 + $0x98] sm:$0xff] }
   0x3   :  { %v93_v5 = vld [vmem:[%s1567_s1 + $0x180] sm:$0xff]  ;;  %v94_v6 = vld [vmem:[%s1567_s1 + $0x188] sm:$0xff]  ;;  %v844_v7 = vpack.c.bf16 %v46_v4, %v45_v2  ;;  %v47_v14 = vld [vmem:[%s1567_s1 + $0x10] sm:$0xff]  ;;  %v846_v16 = vpack.c.bf16 %v64_v13, %v63_v11 }
   0x4   :  { %v874_v8 = vpack.c.bf16 %v94_v6, %v93_v5  ;;  %v77_v9 = vld [vmem:[%s1567_s1 + $0x100] sm:$0xff]  ;;  %v78_v10 = vld [vmem:[%s1567_s1 + $0x108] sm:$0xff]  ;;  %843 = vmatprep.subr.bf16.mxu0 %v842_v3  ;;  %v48_v15 = vld [vmem:[%s1567_s1 + $0x18] sm:$0xff] }
   0x5   :  { %v876_v12 = vpack.c.bf16 %v78_v10, %v77_v9  ;;  %845 = vmatpush3.bf16.msra.mxu0 %v844_v7  ;;  %v848_v17 = vpack.c.bf16 %v48_v15, %v47_v14  ;;  %v95_v18 = vld [vmem:[%s1567_s1 + $0x190] sm:$0xff]  ;;  %v96_v19 = vld [vmem:[%s1567_s1 + $0x198] sm:$0xff]  ;;  %v65_v23 = vld [vmem:[%s1567_s1 + $0xa0] sm:$0xff] }
   0x6   :  { %875 = vmatprep.subr.bf16.mxu1 %v874_v8  ;;  %v79_v20 = vld [vmem:[%s1567_s1 + $0x110] sm:$0xff]  ;;  %v878_v21 = vpack.c.bf16 %v96_v19, %v95_v18  ;;  %v80_v22 = vld [vmem:[%s1567_s1 + $0x118] sm:$0xff]  ;;  %v66_v24 = vld [vmem:[%s1567_s1 + $0xa8] sm:$0xff]  ;;  %847 = vmatprep.subr.bf16.mxu0 %v846_v16 }
   0x7   :  { %877 = vmatpush3.bf16.msra.mxu1 %v876_v12  ;;  %v880_v25 = vpack.c.bf16 %v80_v22, %v79_v20  ;;  %v850_v26 = vpack.c.bf16 %v66_v24, %v65_v23  ;;  %v49_v27 = vld [vmem:[%s1567_s1 + $0x20] sm:$0xff]  ;;  %v50_v28 = vld [vmem:[%s1567_s1 + $0x28] sm:$0xff]  ;;  %v67_v35 = vld [vmem:[%s1567_s1 + $0xb0] sm:$0xff] }
   0x8   :  { %v97_v29 = vld [vmem:[%s1567_s1 + $0x1a0] sm:$0xff]  ;;  %879 = vmatprep.subr.bf16.mxu1 %v878_v21  ;;  %v98_v30 = vld [vmem:[%s1567_s1 + $0x1a8] sm:$0xff]  ;;  %v852_v33 = vpack.c.bf16 %v50_v28, %v49_v27  ;;  %v68_v36 = vld [vmem:[%s1567_s1 + $0xb8] sm:$0xff] }
   0x9   :  { %v81_v31 = vld [vmem:[%s1567_s1 + $0x120] sm:$0xff]  ;;  %v82_v32 = vld [vmem:[%s1567_s1 + $0x128] sm:$0xff]  ;;  %849 = vmatpush3.bf16.msra.mxu0 %v848_v17  ;;  %v882_v34 = vpack.c.bf16 %v98_v30, %v97_v29  ;;  %v51_v37 = vld [vmem:[%s1567_s1 + $0x30] sm:$0xff]  ;;  %v854_v39 = vpack.c.bf16 %v68_v36, %v67_v35 }
   0xa   :  { %851 = vmatprep.subr.bf16.mxu0 %v850_v26  ;;  %v884_v38 = vpack.c.bf16 %v82_v32, %v81_v31  ;;  %v52_v40 = vld [vmem:[%s1567_s1 + $0x38] sm:$0xff]  ;;  %v99_v41 = vld [vmem:[%s1567_s1 + $0x1b0] sm:$0xff]  ;;  %v69_v46 = vld [vmem:[%s1567_s1 + $0xc0] sm:$0xff] }
   0xb   :  { %881 = vmatpush3.bf16.msra.mxu1 %v880_v25  ;;  %v100_v42 = vld [vmem:[%s1567_s1 + $0x1b8] sm:$0xff]  ;;  %v83_v44 = vld [vmem:[%s1567_s1 + $0x130] sm:$0xff]  ;;  %v70_v47 = vld [vmem:[%s1567_s1 + $0xc8] sm:$0xff]  ;;  %v856_v48 = vpack.c.bf16 %v52_v40, %v51_v37 }
   0xc   :  { %883 = vmatprep.subr.bf16.mxu1 %v882_v34  ;;  %v886_v43 = vpack.c.bf16 %v100_v42, %v99_v41  ;;  %v84_v45 = vld [vmem:[%s1567_s1 + $0x138] sm:$0xff]  ;;  %v101_v49 = vld [vmem:[%s1567_s1 + $0x1c0] sm:$0xff]  ;;  %v102_v50 = vld [vmem:[%s1567_s1 + $0x1c8] sm:$0xff]  ;;  %v858_v52 = vpack.c.bf16 %v70_v47, %v69_v46 }
   0xd   :  { %853 = vmatpush3.bf16.msra.mxu0 %v852_v33  ;;  %v888_v51 = vpack.c.bf16 %v84_v45, %v83_v44  ;;  %v53_v53 = vld [vmem:[%s1567_s1 + $0x40] sm:$0xff]  ;;  %v54_v54 = vld [vmem:[%s1567_s1 + $0x48] sm:$0xff]  ;;  %v890_v56 = vpack.c.bf16 %v102_v50, %v101_v49  ;;  %v71_v58 = vld [vmem:[%s1567_s1 + $0xd0] sm:$0xff] }
   0xe   :  { %855 = vmatprep.subr.bf16.mxu0 %v854_v39  ;;  %v85_v55 = vld [vmem:[%s1567_s1 + $0x140] sm:$0xff]  ;;  %v86_v57 = vld [vmem:[%s1567_s1 + $0x148] sm:$0xff]  ;;  %v72_v59 = vld [vmem:[%s1567_s1 + $0xd8] sm:$0xff]  ;;  %v860_v62 = vpack.c.bf16 %v54_v54, %v53_v53 }
   0xf   :  { %885 = vmatpush3.bf16.msra.mxu1 %v884_v38  ;;  %v103_v60 = vld [vmem:[%s1567_s1 + $0x1d0] sm:$0xff]  ;;  %v104_v61 = vld [vmem:[%s1567_s1 + $0x1d8] sm:$0xff]  ;;  %v892_v63 = vpack.c.bf16 %v86_v57, %v85_v55  ;;  %v862_v0 = vpack.c.bf16 %v72_v59, %v71_v58  ;;  %v73_v6 = vld [vmem:[%s1567_s1 + $0xe0] sm:$0xff] }
  0x10   :  { %887 = vmatprep.subr.bf16.mxu1 %v886_v43  ;;  %v55_v1 = vld [vmem:[%s1567_s1 + $0x50] sm:$0xff]  ;;  %v56_v2 = vld [vmem:[%s1567_s1 + $0x58] sm:$0xff]  ;;  %v894_v4 = vpack.c.bf16 %v104_v61, %v103_v60  ;;  %v74_v7 = vld [vmem:[%s1567_s1 + $0xe8] sm:$0xff] }
  0x11   :  { %857 = vmatpush3.bf16.msra.mxu0 %v856_v48  ;;  %v87_v3 = vld [vmem:[%s1567_s1 + $0x150] sm:$0xff]  ;;  %v88_v5 = vld [vmem:[%s1567_s1 + $0x158] sm:$0xff]  ;;  %v105_v8 = vld [vmem:[%s1567_s1 + $0x1e0] sm:$0xff]  ;;  %v864_v10 = vpack.c.bf16 %v56_v2, %v55_v1  ;;  %v866_v14 = vpack.c.bf16 %v74_v7, %v73_v6 }
  0x12   :  { %859 = vmatprep.subr.bf16.mxu0 %v858_v52  ;;  %v106_v9 = vld [vmem:[%s1567_s1 + $0x1e8] sm:$0xff]  ;;  %v57_v11 = vld [vmem:[%s1567_s1 + $0x60] sm:$0xff]  ;;  %v896_v13 = vpack.c.bf16 %v88_v5, %v87_v3  ;;  %v75_v19 = vld [vmem:[%s1567_s1 + $0xf0] sm:$0xff] }
  0x13   :  { %889 = vmatpush3.bf16.msra.mxu1 %v888_v51  ;;  %v58_v12 = vld [vmem:[%s1567_s1 + $0x68] sm:$0xff]  ;;  %v89_v15 = vld [vmem:[%s1567_s1 + $0x160] sm:$0xff]  ;;  %v898_v18 = vpack.c.bf16 %v106_v9, %v105_v8  ;;  %v76_v20 = vld [vmem:[%s1567_s1 + $0xf8] sm:$0xff] }
  0x14   :  { %891 = vmatprep.subr.bf16.mxu1 %v890_v56  ;;  %v90_v16 = vld [vmem:[%s1567_s1 + $0x168] sm:$0xff]  ;;  %v24_v21 = vld [vmem:[%s1566_s0 + $0x18] sm:$0xff]  ;;  %v107_v22 = vld [vmem:[%s1567_s1 + $0x1f0] sm:$0xff]  ;;  %v868_v24 = vpack.c.bf16 %v58_v12, %v57_v11  ;;  %v870_v26 = vpack.c.bf16 %v76_v20, %v75_v19 }
  0x15   :  { %861 = vmatpush3.bf16.msra.mxu0 %v860_v62  ;;  %v22_v17 = vld [vmem:[%s1566_s0 + $0x8] sm:$0xff]  ;;  %v108_v23 = vld [vmem:[%s1567_s1 + $0x1f8] sm:$0xff]  ;;  %324 = vmatprep.mubr.f32.mxu1 %v24_v21  ;;  %v900_v25 = vpack.c.bf16 %v90_v16, %v89_v15  ;;  %v59_v27 = vld [vmem:[%s1567_s1 + $0x70] sm:$0xff] }
  0x16   :  { %863 = vmatprep.subr.bf16.mxu0 %v862_v0  ;;  %244 = vmatprep.mubr.f32.mxu0 %v22_v17  ;;  %v60_v28 = vld [vmem:[%s1567_s1 + $0x78] sm:$0xff]  ;;  %v91_v29 = vld [vmem:[%s1567_s1 + $0x170] sm:$0xff]  ;;  %v902_v30 = vpack.c.bf16 %v108_v23, %v107_v22  ;;  %v125_v32 = vld [vmem:[%s1567_s1 + $0x280] sm:$0xff] }
  0x17   :  { %893 = vmatpush3.bf16.msra.mxu1 %v892_v63  ;;  %v92_v31 = vld [vmem:[%s1567_s1 + $0x178] sm:$0xff]  ;;  %v126_v33 = vld [vmem:[%s1567_s1 + $0x288] sm:$0xff]  ;;  %v157_v34 = vld [vmem:[%s1567_s1 + $0x380] sm:$0xff]  ;;  %v872_v36 = vpack.c.bf16 %v60_v28, %v59_v27 }
  0x18   :  { %895 = vmatprep.subr.bf16.mxu1 %v894_v4  ;;  %v158_v35 = vld [vmem:[%s1567_s1 + $0x388] sm:$0xff]  ;;  %v904_v37 = vpack.c.bf16 %v92_v31, %v91_v29  ;;  %v906_v38 = vpack.c.bf16 %v126_v33, %v125_v32  ;;  %v109_v39 = vld [vmem:[%s1567_s1 + $0x200] sm:$0xff]  ;;  %v127_v44 = vld [vmem:[%s1567_s1 + $0x290] sm:$0xff] }
  0x19   :  { %865 = vmatpush3.bf16.msra.mxu0 %v864_v10  ;;  %v110_v40 = vld [vmem:[%s1567_s1 + $0x208] sm:$0xff]  ;;  %v141_v41 = vld [vmem:[%s1567_s1 + $0x300] sm:$0xff]  ;;  %v938_v42 = vpack.c.bf16 %v158_v35, %v157_v34  ;;  %v128_v45 = vld [vmem:[%s1567_s1 + $0x298] sm:$0xff] }
  0x1a   :  { %867 = vmatprep.subr.bf16.mxu0 %v866_v14  ;;  %v142_v43 = vld [vmem:[%s1567_s1 + $0x308] sm:$0xff]  ;;  %v159_v46 = vld [vmem:[%s1567_s1 + $0x390] sm:$0xff]  ;;  %v160_v47 = vld [vmem:[%s1567_s1 + $0x398] sm:$0xff]  ;;  %v908_v49 = vpack.c.bf16 %v110_v40, %v109_v39  ;;  %v910_v52 = vpack.c.bf16 %v128_v45, %v127_v44 }
  0x1b   :  { %897 = vmatpush3.bf16.msra.mxu1 %v896_v13  ;;  %v21_v48 = vld [vmem:[%s1566_s0] sm:$0xff]  ;;  %v23_v50 = vld [vmem:[%s1566_s0 + $0x10] sm:$0xff]  ;;  %v940_v51 = vpack.c.bf16 %v142_v43, %v141_v41  ;;  %v112_v54 = vld [vmem:[%s1567_s1 + $0x218] sm:$0xff]  ;;  %v942_v56 = vpack.c.bf16 %v160_v47, %v159_v46 }
  0x1c   :  { %899 = vmatprep.subr.bf16.mxu1 %v898_v18  ;;  %v111_v53 = vld [vmem:[%s1567_s1 + $0x210] sm:$0xff]  ;;  %v144_v57 = vld [vmem:[%s1567_s1 + $0x318] sm:$0xff]  ;;  %v129_v58 = vld [vmem:[%s1567_s1 + $0x2a0] sm:$0xff] }
  0x1d   :  { %869 = vmatpush3.bf16.msra.mxu0 %v868_v24  ;;  %v143_v55 = vld [vmem:[%s1567_s1 + $0x310] sm:$0xff]  ;;  %v130_v59 = vld [vmem:[%s1567_s1 + $0x2a8] sm:$0xff]  ;;  %v161_v60 = vld [vmem:[%s1567_s1 + $0x3a0] sm:$0xff]  ;;  %v912_v62 = vpack.c.bf16 %v112_v54, %v111_v53 }
  0x1e   :  { %871 = vmatprep.subr.bf16.mxu0 %v870_v26  ;;  %v162_v61 = vld [vmem:[%s1567_s1 + $0x3a8] sm:$0xff]  ;;  %v113_v63 = vld [vmem:[%s1567_s1 + $0x220] sm:$0xff]  ;;  %v944_v1 = vpack.c.bf16 %v144_v57, %v143_v55  ;;  %v914_v2 = vpack.c.bf16 %v130_v59, %v129_v58  ;;  %v131_v5 = vld [vmem:[%s1567_s1 + $0x2b0] sm:$0xff] }
  0x1f   :  { %901 = vmatpush3.bf16.msra.mxu1 %v900_v25  ;;  %v114_v0 = vld [vmem:[%s1567_s1 + $0x228] sm:$0xff]  ;;  %v145_v3 = vld [vmem:[%s1567_s1 + $0x320] sm:$0xff]  ;;  %v946_v6 = vpack.c.bf16 %v162_v61, %v161_v60  ;;  %v132_v7 = vld [vmem:[%s1567_s1 + $0x2b8] sm:$0xff] }
  0x20   :  { %903 = vmatprep.subr.bf16.mxu1 %v902_v30  ;;  %v146_v4 = vld [vmem:[%s1567_s1 + $0x328] sm:$0xff]  ;;  %v163_v8 = vld [vmem:[%s1567_s1 + $0x3b0] sm:$0xff]  ;;  %v164_v10 = vld [vmem:[%s1567_s1 + $0x3b8] sm:$0xff]  ;;  %v916_v13 = vpack.c.bf16 %v114_v0, %v113_v63  ;;  %v918_v18 = vpack.c.bf16 %v132_v7, %v131_v5 }
  0x21   :  { %873 = vmatpush3.bf16.msra.mxu0 %v872_v36  ;;  %v30_v9 = vld [vmem:[%s1566_s0 + $0x48] sm:$0xff]  ;;  %v29_v11 = vld [vmem:[%s1566_s0 + $0x40] sm:$0xff]  ;;  %v32_v12 = vld [vmem:[%s1566_s0 + $0x58] sm:$0xff]  ;;  %v948_v17 = vpack.c.bf16 %v146_v4, %v145_v3  ;;  %v950_v22 = vpack.c.bf16 %v164_v10, %v163_v8 }
  0x22   :  { %907 = vmatprep.subr.bf16.mxu0 %v906_v38  ;;  %v115_v14 = vld [vmem:[%s1567_s1 + $0x230] sm:$0xff]  ;;  %v116_v15 = vld [vmem:[%s1567_s1 + $0x238] sm:$0xff]  ;;  %v133_v21 = vld [vmem:[%s1567_s1 + $0x2c0] sm:$0xff] }
  0x23   :  { %905 = vmatpush3.bf16.msra.mxu1 %v904_v37  ;;  %v31_v16 = vld [vmem:[%s1566_s0 + $0x50] sm:$0xff]  ;;  %v148_v20 = vld [vmem:[%s1567_s1 + $0x338] sm:$0xff]  ;;  %v134_v23 = vld [vmem:[%s1567_s1 + $0x2c8] sm:$0xff]  ;;  %v920_v29 = vpack.c.bf16 %v116_v15, %v115_v14 }
  0x24   :  { %939 = vmatprep.subr.bf16.mxu1 %v938_v42  ;;  %245 = vmatmul.mubr.f32.vlgmr.msra.gmra.mrb[0].mxu0 %v21_v48  ;;  %v147_v19 = vld [vmem:[%s1567_s1 + $0x330] sm:$0xff]  ;;  %v165_v24 = vld [vmem:[%s1567_s1 + $0x3c0] sm:$0xff]  ;;  %v38_v25 = vld [vmem:[%s1566_s0 + $0x88] sm:$0xff]  ;;  %v922_v33 = vpack.c.bf16 %v134_v23, %v133_v21 }
  0x25   :  { %909 = vmatpush3.bf16.msra.mxu0 %v908_v49  ;;  %249 = vmatprep.mubr.f32.mxu0 %v30_v9  ;;  %v166_v26 = vld [vmem:[%s1567_s1 + $0x3c8] sm:$0xff]  ;;  %v37_v27 = vld [vmem:[%s1566_s0 + $0x80] sm:$0xff]  ;;  %v40_v28 = vld [vmem:[%s1566_s0 + $0x98] sm:$0xff]  ;;  %v952_v32 = vpack.c.bf16 %v148_v20, %v147_v19 }
  0x26   :  { %325 = vmatmul.mubr.f32.vlgmr.msra.gmra.mrb[0].mxu1 %v23_v50  ;;  %911 = vmatprep.subr.bf16.mxu0 %v910_v52  ;;  %v117_v30 = vld [vmem:[%s1567_s1 + $0x240] sm:$0xff]  ;;  %v39_v31 = vld [vmem:[%s1566_s0 + $0x90] sm:$0xff]  ;;  %v118_v34 = vld [vmem:[%s1567_s1 + $0x248] sm:$0xff]  ;;  %v954_v37 = vpack.c.bf16 %v166_v26, %v165_v24 }
  0x27   :  { %941 = vmatpush3.bf16.msra.mxu1 %v940_v51  ;;  %329 = vmatprep.mubr.f32.mxu1 %v32_v12  ;;  %v149_v35 = vld [vmem:[%s1567_s1 + $0x340] sm:$0xff]  ;;  %v150_v36 = vld [vmem:[%s1567_s1 + $0x348] sm:$0xff]  ;;  %v135_v38 = vld [vmem:[%s1567_s1 + $0x2d0] sm:$0xff]  ;;  %v924_v44 = vpack.c.bf16 %v118_v34, %v117_v30 }
  0x28   :  { %943 = vmatprep.subr.bf16.mxu1 %v942_v56  ;;  %250 = vmatmul.mubr.f32.gmra.mrb[2].mxu0 %v29_v11  ;;  %v136_v39 = vld [vmem:[%s1567_s1 + $0x2d8] sm:$0xff]  ;;  %v26_v40 = vld [vmem:[%s1566_s0 + $0x28] sm:$0xff]  ;;  %v167_v41 = vld [vmem:[%s1567_s1 + $0x3d0] sm:$0xff]  ;;  %v956_v46 = vpack.c.bf16 %v150_v36, %v149_v35 }
  0x29   :  { %913 = vmatpush3.bf16.msra.mxu0 %v912_v62  ;;  %254 = vmatprep.mubr.f32.mxu0 %v38_v25  ;;  %v168_v42 = vld [vmem:[%s1567_s1 + $0x3d8] sm:$0xff]  ;;  %v119_v45 = vld [vmem:[%s1567_s1 + $0x250] sm:$0xff]  ;;  %v926_v47 = vpack.c.bf16 %v136_v39, %v135_v38  ;;  %v137_v52 = vld [vmem:[%s1567_s1 + $0x2e0] sm:$0xff] }
  0x2a   :  { %915 = vmatprep.subr.bf16.mxu0 %v914_v2  ;;  %330 = vmatmul.mubr.f32.gmra.mrb[2].mxu1 %v31_v16  ;;  %v28_v43 = vld [vmem:[%s1566_s0 + $0x38] sm:$0xff]  ;;  %v151_v49 = vld [vmem:[%s1567_s1 + $0x350] sm:$0xff]  ;;  %v958_v51 = vpack.c.bf16 %v168_v42, %v167_v41  ;;  %v138_v53 = vld [vmem:[%s1567_s1 + $0x2e8] sm:$0xff] }
  0x2b   :  { %945 = vmatpush3.bf16.msra.mxu1 %v944_v1  ;;  %334 = vmatprep.mubr.f32.mxu1 %v40_v28  ;;  %v120_v48 = vld [vmem:[%s1567_s1 + $0x258] sm:$0xff] }
  0x2c   :  { %947 = vmatprep.subr.bf16.mxu1 %v946_v6  ;;  %255 = vmatmul.mubr.f32.gmra.mrb[4].mxu0 %v37_v27  ;;  %v152_v50 = vld [vmem:[%s1567_s1 + $0x358] sm:$0xff] }
  0x2d   :  { %917 = vmatpush3.bf16.msra.mxu0 %v916_v13  ;;  %404 = vmatprep.mubr.f32.mxu0 %v26_v40 }
  0x2e   :  { %919 = vmatprep.subr.bf16.mxu0 %v918_v18  ;;  %335 = vmatmul.mubr.f32.gmra.mrb[4].mxu1 %v39_v31 }
  0x2f   :  { %949 = vmatpush3.bf16.msra.mxu1 %v948_v17  ;;  %484 = vmatprep.mubr.f32.mxu1 %v28_v43 }
  0x30   :  { %951 = vmatprep.subr.bf16.mxu1 %v950_v22 }
  0x31   :  { %921 = vmatpush3.bf16.msra.mxu0 %v920_v29 }
  0x32   :  { %923 = vmatprep.subr.bf16.mxu0 %v922_v33 }
  0x33   :  { %953 = vmatpush3.bf16.msra.mxu1 %v952_v32 }
  0x34   :  { %955 = vmatprep.subr.bf16.mxu1 %v954_v37 }
  0x35   :  { %10 = vsyncpa [#allocation3], 0  ;;  %v169_v54 = vld [vmem:[%s1567_s1 + $0x3e0] sm:$0xff]  ;;  %v170_v55 = vld [vmem:[%s1567_s1 + $0x3e8] sm:$0xff]  ;;  %925 = vmatpush3.bf16.msra.mxu0 %v924_v44  ;;  %v928_v56 = vpack.c.bf16 %v120_v48, %v119_v45  ;;  %v960_v57 = vpack.c.bf16 %v152_v50, %v151_v49  ;;  %v930_v58 = vpack.c.bf16 %v138_v53, %v137_v52  ;;  %v1026_v27 = vmov 0.0|0.0   ;;  %s1029_s12 = smov [#allocation2]  }
  0x36   :  { %927 = vmatprep.subr.bf16.mxu0 %v926_v47  ;;  %v121_v59 = vld [vmem:[%s1567_s1 + $0x260] sm:$0xff]  ;;  %v122_v60 = vld [vmem:[%s1567_s1 + $0x268] sm:$0xff]  ;;  %v962_v62 = vpack.c.bf16 %v170_v55, %v169_v54  ;;  %v139_v0 = vld [vmem:[%s1567_s1 + $0x2f0] sm:$0xff]  ;;  %vm1027_vm0 = vmmov 0   ;;  %v1028_v37 = vmov 0.0   ;;  %vm527_vm1 = vcmask 523264  }
  0x37   :  { %957 = vmatpush3.bf16.msra.mxu1 %v956_v46  ;;  %v153_v61 = vld [vmem:[%s1567_s1 + $0x360] sm:$0xff]  ;;  %v154_v63 = vld [vmem:[%s1567_s1 + $0x368] sm:$0xff]  ;;  %v140_v1 = vld [vmem:[%s1567_s1 + $0x2f8] sm:$0xff]  ;;  %v932_v4 = vpack.c.bf16 %v122_v60, %v121_v59  ;;  %vm617_vm2 = vcmask 293888   ;;  %s626_s13 = sshll.u32 %s1029_s12, 4  ;;  %s627_s13 = int_to_ptr.vmem [resolvable:$true] %s626_s13 }
  0x38   :  { %959 = vmatprep.subr.bf16.mxu1 %v958_v51  ;;  %v171_v2 = vld [vmem:[%s1567_s1 + $0x3f0] sm:$0xff]  ;;  %v172_v3 = vld [vmem:[%s1567_s1 + $0x3f8] sm:$0xff]  ;;  %v964_v5 = vpack.c.bf16 %v154_v63, %v153_v61  ;;  %v934_v6 = vpack.c.bf16 %v140_v1, %v139_v0  ;;  %v25_v14 = vld [vmem:[%s1566_s0 + $0x20] sm:$0xff]  ;;  %s1002_s14 = scalar_lea.vmem %s627_s13, 384  ;;  %p1007_p1 = scmp.lt.s32.totalorder %s627_s13, %s627_s13 }
  0x39   :  { %929 = vmatpush3.bf16.msra.mxu0 %v928_v56  ;;  %v123_v7 = vld [vmem:[%s1567_s1 + $0x270] sm:$0xff]  ;;  %v124_v8 = vld [vmem:[%s1567_s1 + $0x278] sm:$0xff]  ;;  %v966_v9 = vpack.c.bf16 %v172_v3, %v171_v2  ;;  %v34_v16 = vld [vmem:[%s1566_s0 + $0x68] sm:$0xff]  ;;  %p1003_p0 = scmp.ne.s32.totalorder %s627_s13, %s1002_s14  ;;  %p1008_p2 = scmp.lt.s32.totalorder %s1002_s14, %s1002_s14 }
  0x3a   :  { %931 = vmatprep.subr.bf16.mxu0 %v930_v58  ;;  %v155_v10 = vld [vmem:[%s1567_s1 + $0x370] sm:$0xff]  ;;  %v156_v11 = vld [vmem:[%s1567_s1 + $0x378] sm:$0xff]  ;;  %v936_v12 = vpack.c.bf16 %v124_v8, %v123_v7  ;;  %v33_v18 = vld [vmem:[%s1566_s0 + $0x60] sm:$0xff] }
  0x3b   :  { %961 = vmatpush3.bf16.msra.mxu1 %v960_v57  ;;  %v968_v13 = vpack.c.bf16 %v156_v11, %v155_v10  ;;  %v27_v15 = vld [vmem:[%s1566_s0 + $0x30] sm:$0xff]  ;;  %v36_v17 = vld [vmem:[%s1566_s0 + $0x78] sm:$0xff]  ;;  %v42_v20 = vld [vmem:[%s1566_s0 + $0xa8] sm:$0xff]  ;;  %p1009_p3 = por %p1008_p2, %p1007_p1 }
  0x3c   :  { %963 = vmatprep.subr.bf16.mxu1 %v962_v62  ;;  %v35_v19 = vld [vmem:[%s1566_s0 + $0x70] sm:$0xff]  ;;  %v44_v21 = vld [vmem:[%s1566_s0 + $0xb8] sm:$0xff]  ;;  %v41_v22 = vld [vmem:[%s1566_s0 + $0xa0] sm:$0xff] }
  0x3d   :  { %933 = vmatpush3.bf16.msra.mxu0 %v932_v4  ;;  %v43_v23 = vld [vmem:[%s1566_s0 + $0xb0] sm:$0xff]  ;;  %v512_v24 = vld [vmem:[%s1569_s3] sm:$0xff]  ;;  %v513_v25 = vld [vmem:[%s1569_s3 + $0x8] sm:$0xff]  ;;  %p1010_p4 = pnand %p1009_p3, %p1003_p0 }
  0x3e   :  { %935 = vmatprep.subr.bf16.mxu0 %v934_v6  ;;  %v971_v26 = vpack.c.bf16 %v513_v25, %v512_v24  ;;  %v514_v28 = vld [vmem:[%s1569_s3 + $0x10] sm:$0xff]  ;;  %v515_v29 = vld [vmem:[%s1569_s3 + $0x18] sm:$0xff]  ;;  %v516_v31 = vld [vmem:[%s1569_s3 + $0x20] sm:$0xff] }
  0x3f   :  { %965 = vmatpush3.bf16.msra.mxu1 %v964_v5  ;;  %v974_v30 = vpack.c.bf16 %v515_v29, %v514_v28  ;;  %v517_v32 = vld [vmem:[%s1569_s3 + $0x28] sm:$0xff]  ;;  %v518_v34 = vld [vmem:[%s1569_s3 + $0x30] sm:$0xff]  ;;  %v519_v35 = vld [vmem:[%s1569_s3 + $0x38] sm:$0xff] }
  0x40   :  { %967 = vmatprep.subr.bf16.mxu1 %v966_v9  ;;  %v977_v33 = vpack.c.bf16 %v517_v32, %v516_v31  ;;  %v980_v36 = vpack.c.bf16 %v519_v35, %v518_v34  ;;  %v637_v39 = vld [vmem:[%s1568_s2] ss:$0 sm:$0xff] }
  0x41   :  { %937 = vmatpush3.bf16.msra.mxu0 %v936_v12  ;;  %v638_v35 = vld [vmem:[%s1570_s4] ss:$0 sm:$0xff] }
  0x42   :  { %970 = vmatprep.subr.bf16.mxu0 %v1026_v27 }
  0x43   :  { %969 = vmatpush3.bf16.msra.mxu1 %v968_v13 }
  0x44   :  { %405 = vmatmul.mubr.f32.vlgmr.msra.gmra.mrb[6].mxu0 %v25_v14  ;;  %982 = vmatprep.subr.bf16.mxu1 %v1026_v27 }
  0x45   :  { %409 = vmatprep.mubr.f32.mxu0 %v34_v16  ;;  %972 = vmatpush3.bf16.msra.mxu0 %v971_v26 }
  0x46   :  { %485 = vmatmul.mubr.f32.vlgmr.msra.gmra.mrb[6].mxu1 %v27_v15  ;;  %973 = vmatprep.subr.bf16.mxu0 %v1026_v27 }
  0x47   :  { %489 = vmatprep.mubr.f32.mxu1 %v36_v17  ;;  %986 = vmatpush3.bf16.msra.mxu1 %v971_v26 }
  0x48   :  { %410 = vmatmul.mubr.f32.gmra.mrb[8].mxu0 %v33_v18  ;;  %983 = vmatprep.subr.bf16.mxu1 %v1026_v27 }
  0x49   :  { %414 = vmatprep.mubr.f32.mxu0 %v42_v20  ;;  %975 = vmatpush3.bf16.msra.mxu0 %v974_v30 }
  0x4a   :  { %490 = vmatmul.mubr.f32.gmra.mrb[8].mxu1 %v35_v19  ;;  %976 = vmatprep.subr.bf16.mxu0 %v1026_v27 }
  0x4b   :  { %494 = vmatprep.mubr.f32.mxu1 %v44_v21  ;;  %987 = vmatpush3.bf16.msra.mxu1 %v974_v30 }
  0x4c   :  { %415 = vmatmul.mubr.f32.gmra.mrb[10].mxu0 %v41_v22  ;;  %984 = vmatprep.subr.bf16.mxu1 %v1026_v27 }
  0x4d   :  { %978 = vmatpush3.bf16.msra.mxu0 %v977_v33  ;;  %833 = vmatprep.mubr.msk.f32.mxu0 %vm1027_vm0, %v1028_v37 }
  0x4e   :  { %495 = vmatmul.mubr.f32.gmra.mrb[10].mxu1 %v43_v23  ;;  %979 = vmatprep.subr.bf16.mxu0 %v1026_v27 }
  0x4f   :  { %988 = vmatpush3.bf16.msra.mxu1 %v977_v33  ;;  %836 = vmatprep.mubr.msk.f32.mxu1 %vm1027_vm0, %v1028_v37 }
  0x50   :  { %985 = vmatprep.subr.bf16.mxu1 %v1026_v27 }
  0x51   :  { %981 = vmatpush3.bf16.msra.mxu0 %v980_v36 }
  0x53   :  { %989 = vmatpush3.bf16.msra.mxu1 %v980_v36 }
  0xf7   :  { %v674_v38 = vpop.f32.mrb[0].mxu0 }
  0xf8   :  { %v675_v40 = vpop.f32.mrb[1].mxu0 }
  0xf9   :  { %v715_v41 = vpop.f32.mrb[0].mxu1  ;;  %v676_v42 = vadd.f32 %v675_v40, %v674_v38 }
  0xfa   :  { %v716_v43 = vpop.f32.mrb[1].mxu1 }
  0xfb   :  { %v717_v44 = vadd.f32 %v716_v43, %v715_v41  ;;  %v247_v45 = vadd.f32 %v676_v42, %v637_v39  ;;  %v677_v47 = vpop.f32.mrb[2].mxu0 }
  0xfc   :  { %v678_v48 = vpop.f32.mrb[3].mxu0 }
  0xfd   :  { %v327_v46 = vadd.f32 %v717_v44, %v247_v45  ;;  %v718_v49 = vpop.f32.mrb[2].mxu1  ;;  %v679_v50 = vadd.f32 %v678_v48, %v677_v47 }
  0xfe   :  { %v719_v51 = vpop.f32.mrb[3].mxu1 }
  0xff   :  { %v720_v52 = vadd.f32 %v719_v51, %v718_v49  ;;  %v252_v53 = vadd.f32 %v679_v50, %v637_v39  ;;  %v680_v54 = vpop.f32.mrb[4].mxu0 }
 0x100   :  { %v681_v55 = vpop.f32.mrb[5].mxu0 }
 0x101   :  { %v721_v56 = vpop.f32.mrb[4].mxu1  ;;  %v332_v57 = vadd.f32 %v720_v52, %v252_v53  ;;  %v682_v58 = vadd.f32 %v681_v55, %v680_v54 }
 0x102   :  { %v722_v59 = vpop.f32.mrb[5].mxu1 }
 0x103   :  { %v723_v60 = vadd.f32 %v722_v59, %v721_v56  ;;  %v257_v61 = vadd.f32 %v682_v58, %v637_v39 }
 0x105   :  { %v337_v62 = vadd.f32 %v723_v60, %v257_v61 }
 0x117   :  { %v756_v63 = vpop.f32.mrb[6].mxu0 }
 0x118   :  { %v757_v0 = vpop.f32.mrb[7].mxu0 }
 0x119   :  { %v797_v1 = vpop.f32.mrb[6].mxu1  ;;  %v758_v2 = vadd.f32 %v757_v0, %v756_v63 }
 0x11a   :  { %v798_v3 = vpop.f32.mrb[7].mxu1 }
 0x11b   :  { %v799_v4 = vadd.f32 %v798_v3, %v797_v1  ;;  %v407_v5 = vadd.f32 %v758_v2, %v327_v46  ;;  %v759_v6 = vpop.f32.mrb[8].mxu0 }
 0x11c   :  { %v760_v7 = vpop.f32.mrb[9].mxu0 }
 0x11d   :  { %v800_v8 = vpop.f32.mrb[8].mxu1  ;;  %v487_v9 = vadd.f32 %v799_v4, %v407_v5  ;;  %v761_v10 = vadd.f32 %v760_v7, %v759_v6 }
 0x11e   :  { %v801_v11 = vpop.f32.mrb[9].mxu1 }
 0x11f   :  { %v802_v12 = vadd.f32 %v801_v11, %v800_v8  ;;  %v500_v13 = vmul.f32 0.5, %v487_v9  ;;  %v412_v14 = vadd.f32 %v761_v10, %v332_v57  ;;  %v762_v15 = vpop.f32.mrb[10].mxu0 }
 0x120   :  { %v763_v16 = vpop.f32.mrb[11].mxu0 }
 0x121   :  { %v803_v17 = vpop.f32.mrb[10].mxu1  ;;  %996 = vtanh.f32 %v500_v13  ;;  %v492_v18 = vadd.f32 %v802_v12, %v412_v14  ;;  %v764_v19 = vadd.f32 %v763_v16, %v762_v15 }
 0x122   :  { %v804_v20 = vpop.f32.mrb[11].mxu1 }
 0x123   :  { %v805_v21 = vadd.f32 %v804_v20, %v803_v17  ;;  %v501_v22 = vmul.f32 0.5, %v492_v18  ;;  %v417_v23 = vadd.f32 %v764_v19, %v337_v62 }
 0x125   :  { %998 = vtanh.f32 %v501_v22  ;;  %v497_v24 = vadd.f32 %v805_v21, %v417_v23 }
 0x127   :  { %v502_v25 = vmul.f32 0.5, %v497_v24 }
 0x129   :  { %1000 = vtanh.f32 %v502_v25 }
 0x12b   :  { %v997_v26 = vpop.eup %996 }
 0x12c   :  { %v506_v27 = vadd.f32 1.0, %v997_v26 }
 0x12e   :  { %v509_v28 = vmul.f32 0.5, %v506_v27 }
 0x12f   :  { %v999_v29 = vpop.eup %998 }
 0x130   :  { %v507_v30 = vadd.f32 1.0, %v999_v29  ;;  %834 = vmatmul.mubr.msk.f32.vlgmr.msra.gmra.mrb[12].mxu0 %vm527_vm1, %v509_v28 }
 0x132   :  { %v510_v31 = vmul.f32 0.5, %v507_v30 }
 0x133   :  { %v1001_v32 = vpop.eup %1000 }
 0x134   :  { %v508_v33 = vadd.f32 1.0, %v1001_v32  ;;  %837 = vmatmul.mubr.msk.f32.vlgmr.msra.gmra.mrb[12].mxu1 %vm527_vm1, %v510_v31 }
 0x135   :  { %839 = vmatprep.mubr.msk.f32.mxu1 %vm1027_vm0, %v1028_v37 }
 0x136   :  { %v511_v34 = vmul.f32 0.5, %v508_v33 }
 0x138   :  { %840 = vmatmul.mubr.msk.f32.gmra.mrb[14].mxu1 %vm527_vm1, %v511_v34 }
 0x203   :  { %v603_v36 = vpop.f32.mrb[12].mxu0 }
 0x204   :  { %v604_v38 = vadd.f32 %v638_v35, %v603_v36  ;;  %v835_v39 = vpop.f32.mrb[13].mxu0 }
 0x206   :  { %618 = vst.msk [vmem:[#allocation2] sm:$0xff] %vm617_vm2, %v604_v38 }
 0x207   :  { %v608_v40 = vpop.f32.mrb[12].mxu1 }
 0x208   :  { %v609_v41 = vadd.f32 %v638_v35, %v608_v40  ;;  %v838_v42 = vpop.f32.mrb[13].mxu1 }
 0x20a   :  { %619 = vst.msk [vmem:[#allocation2 + $0x8] sm:$0xff] %vm617_vm2, %v609_v41 }
 0x20b   :  { %v613_v43 = vpop.f32.mrb[14].mxu1 }
 0x20c   :  { %v614_v37 = vadd.f32 %v638_v35, %v613_v43  ;;  %v841_v44 = vpop.f32.mrb[15].mxu1 }
 0x20e   :  { %620 = vst.msk [vmem:[#allocation2 + $0x10] sm:$0xff] %vm617_vm2, %v614_v37 }
 0x20f   :  { %1013 = shalt.err (!%p1010_p4)
}
 0x210   :  { %s1014_s16 = scalar_lea.hbm %s1571_s5, 384 }
 0x211   :  { %p1015_p5 = scmp.ne.s32.totalorder %s1571_s5, %s1014_s16  ;;  %p1018_p6 = scmp.lt.u32.totalorder %s1014_s16, %s1571_s5 }
 0x213   :  { %p1020_p7 = pnand %p1018_p6, %p1015_p5 }
 0x215   :  { %1023 = shalt.err (!%p1020_p7)
}
 0x216   :  { %s1030_s21 = smov 128   ;;  %s1031_s22 = smov 8  }
 0x217   :  { %632 = dma.vmem_to_hbm [thread:$0]  %s627_s13, 384, %s1571_s5, [#allocation3], %s1030_s21, %s1030_s21, %s1031_s22  }
 0x218   :  { %1024 = dma.done.wait [#allocation3], 384  }
 0x219   :  { %1025 = vsyncadd [#allocation3], 4294966912 }
 0x21a   :  { %636 = vsyncpa [#allocation3], 1 }

</bundles_post_ra>
